<compile_context>
chip_gen: v7x
topology: tpu7x:2x2x1
jax: 0.10.0
libtpu: 0.0.40
codegen_flags: <defaults>
</compile_context>

<pallas_src>
import jax
import jax.numpy as jnp
from jax.experimental import pallas as pl
from jax.experimental.pallas import tpu as pltpu

_NEG_BIG = -1e30  # finite stand-in for -inf (avoids inf-inf NaNs in online softmax)


def _round_up(a, b):
    return (a + b - 1) // b * b


def attention_with_classifier(x, params, *, tile_n=None, num_splits=2):
    """x: (N, L) float32 or bfloat16 bag of instance features.

    Returns (K, num_cls) float32 predictions. `num_splits` partitions the N
    range into independent online-softmax partials (maps to the v7x 2-TC
    'parallel' grid axis; harmless on 1-TC chips).
    """
    N, L = x.shape
    xdt = x.dtype
    itemsize = jnp.dtype(xdt).itemsize
    f32 = jnp.float32

    # Gating weights in the activation dtype so bf16 x -> bf16 MXU (native on
    # v5e/v6e/v7x). Everything post-matmul stays f32.
    wv = params["wv"].astype(xdt)          # (L, D)
    wu = params["wu"].astype(xdt)          # (L, D)
    bv = params["bv"].astype(f32)          # (1, D)
    bu = params["bu"].astype(f32)          # (1, D)
    ww = params["ww"].astype(f32)          # (K, D)   torch-native (out, in)
    bw = params["bw"].astype(f32)          # (1, K)
    wc = params["wc"].astype(f32)          # (L, C)
    bc = params["bc"].astype(f32)          # (1, C)
    D = wv.shape[1]
    K = ww.shape[0]

    # Fuse V/U projections into one (L, 2D) MXU pass only when the split of the
    # fused output lands on a 128-lane boundary; otherwise slicing g would force
    # a cross-lane relayout that costs more than the fusion saves.
    fuse_vu = (D % 128 == 0)
    if fuse_vu:
        w_arrays = [jnp.concatenate([wv, wu], axis=1),     # (L, 2D)
                    jnp.concatenate([bv, bu], axis=1),     # (1, 2D) f32
                    ww, bw]
    else:
        w_arrays = [wv, bv, wu, bu, ww, bw]
    n_w = len(w_arrays)
    weight_bytes = sum(int(w.size) * w.dtype.itemsize for w in w_arrays)

    # ----- tiling & VMEM budget (generation-aware) -----
    if tile_n is None:
        tile_n = 4096 if itemsize <= 2 else 2048
    tile_n = max(16, min(_round_up(int(tile_n), 16), _round_up(N, 16)))

    vmem_cap = 128 << 20
    try:
        vmem_cap = int(pltpu.get_tpu_info().vmem_capacity_bytes)
    except Exception:
        pass  # fall back to the conservative 128 MiB assumption
    vmem_budget = int(0.75 * vmem_cap)     # leave headroom for compiler scratch

    def _vmem_need(t):
        x_tile = t * L * itemsize
        # f32 temporaries: g (2D), a_v+a_u (2D), gated (D), logits/p (K-ish),
        # plus the masked copy of the x tile.
        tmp = 4 * t * (2 * D + 2 * D + D + 4 * max(K, 1)) + x_tile
        state = 4 * (K * L + 4 * K) + 2 * 4 * (K * L + 2 * K)
        return 2 * x_tile + 2 * weight_bytes + tmp + state + (2 << 20)

    while tile_n > 256 and _vmem_need(tile_n) > vmem_budget:
        tile_n = max(256, _round_up(tile_n // 2, 16))
    vmem_limit = int(min(max(_vmem_need(tile_n), 8 << 20), vmem_budget))

    total_tiles = pl.cdiv(N, tile_n)
    num_splits = max(1, min(int(num_splits), total_tiles))
    tiles_per_split = pl.cdiv(total_tiles, num_splits)
    n_covered = num_splits * tiles_per_split * tile_n
    needs_mask = n_covered > N
    last_tile = total_tiles - 1

    if num_splits * tiles_per_split == total_tiles:
        x_index = lambda c, i: (c * tiles_per_split + i, 0)
    else:
        # Splits whose range overshoots re-read the last real tile; their rows
        # are fully masked in-kernel so they contribute nothing.
        x_index = lambda c, i: (jnp.minimum(c * tiles_per_split + i, last_tile), 0)

    def kernel(*refs):
        x_ref = refs[0]
        w_refs = refs[1:1 + n_w]
        m_out, l_out, acc_out = refs[1 + n_w:4 + n_w]
        m_sc, l_sc, acc_sc = refs[4 + n_w:]

        c = pl.program_id(0)
        i = pl.program_id(1)

        @pl.when(i == 0)
        def _init():
            m_sc[...] = jnp.full_like(m_sc, _NEG_BIG)
            l_sc[...] = jnp.zeros_like(l_sc)
            acc_sc[...] = jnp.zeros_like(acc_sc)

        # x stays in its native dtype: bf16 feeds the MXU directly.
        x_t = x_ref[...]                                            # (tile_n, L)
        if needs_mask:
            tile_idx = c * tiles_per_split + i                      # unclamped
            row = (jax.lax.broadcasted_iota(jnp.int32, (tile_n, 1), 0)
                   + tile_idx * tile_n)
            valid = row < N                                         # (tile_n, 1)
            # TODO(synk): only the single partial tile needs this (tile_n, L)
            # zeroing; predicate it on the last grid step once VALU-bound.
            x_t = jnp.where(valid, x_t, 0.0)

        if fuse_vu:
            wvu_ref, bvu_ref, ww_ref, bw_ref = w_refs
            g = jnp.dot(x_t, wvu_ref[...],
                        preferred_element_type=jnp.float32) + bvu_ref[...]
            a_v = jnp.tanh(g[:, :D])
            a_u = jax.nn.sigmoid(g[:, D:])
        else:
            wv_ref, bv_ref, wu_ref, bu_ref, ww_ref, bw_ref = w_refs
            a_v = jnp.tanh(
                jnp.dot(x_t, wv_ref[...],
                        preferred_element_type=jnp.float32) + bv_ref[...])
            a_u = jax.nn.sigmoid(
                jnp.dot(x_t, wu_ref[...],
                        preferred_element_type=jnp.float32) + bu_ref[...])
        gated = a_v * a_u                                           # (tile_n, D) f32

        # Attention logits (tile_n, K).
        if K == 1:
            logits = (jnp.sum(gated * ww_ref[...], axis=-1, keepdims=True)
                      + bw_ref[...])
        else:
            logits = jax.lax.dot_general(
                gated, ww_ref[...],
                dimension_numbers=(((1,), (1,)), ((), ())),
                preferred_element_type=jnp.float32) + bw_ref[...]
        if needs_mask:
            logits = jnp.where(valid, logits, _NEG_BIG)

        # Online softmax update; state must stay f32 (the -1e30 sentinel and
        # exp underflow behavior break in bf16).
        m_old = m_sc[...]                                           # (1, K)
        m_new = jnp.maximum(m_old, jnp.max(logits, axis=0, keepdims=True))
        scale = jnp.exp(m_old - m_new)
        p = jnp.exp(logits - m_new)                                 # (tile_n, K) f32
        l_sc[...] = scale * l_sc[...] + jnp.sum(p, axis=0, keepdims=True)
        if K == 1:
            # TODO(synk): on v7x this VPU multiply+reduce can move to the idle
            # MXU (dot_general) if the bundle shows the VALU slot saturated.
            upd = jnp.sum(p * x_t, axis=0, keepdims=True)           # (1, L) f32
            acc_sc[...] = scale * acc_sc[...] + upd
        else:
            upd = jax.lax.dot_general(
                p.astype(x_t.dtype), x_t,
                dimension_numbers=(((0,), (0,)), ((), ())),
                preferred_element_type=jnp.float32)                 # (K, L)
            acc_sc[...] = jnp.reshape(scale, (K, 1)) * acc_sc[...] + upd
        m_sc[...] = m_new

        @pl.when(i == tiles_per_split - 1)
        def _flush():
            m_out[0] = m_sc[...]
            l_out[0] = l_sc[...]
            acc_out[0] = acc_sc[...]

    cost = pl.CostEstimate(
        flops=int(4 * n_covered * L * D + 2 * n_covered * D * K
                  + 2 * n_covered * L * K),
        transcendentals=int(2 * n_covered * D + 2 * n_covered * K),
        bytes_accessed=int(N * L * itemsize + weight_bytes
                           + 4 * num_splits * (K * L + 2 * K)),
    )

    m_p, l_p, acc_p = pl.pallas_call(
        kernel,
        out_shape=(
            jax.ShapeDtypeStruct((num_splits, 1, K), jnp.float32),   # partial m
            jax.ShapeDtypeStruct((num_splits, 1, K), jnp.float32),   # partial l
            jax.ShapeDtypeStruct((num_splits, K, L), jnp.float32),   # partial acc
        ),
        grid=(num_splits, tiles_per_split),
        in_specs=[pl.BlockSpec((tile_n, L), x_index)]                # x streamed
                + [pl.BlockSpec(w.shape, lambda c, i: (0, 0))        # weights resident
                   for w in w_arrays],
        out_specs=(
            pl.BlockSpec((1, 1, K), lambda c, i: (c, 0, 0)),
            pl.BlockSpec((1, 1, K), lambda c, i: (c, 0, 0)),
            pl.BlockSpec((1, K, L), lambda c, i: (c, 0, 0)),
        ),
        scratch_shapes=[
            pltpu.VMEM((1, K), jnp.float32),    # running max m
            pltpu.VMEM((1, K), jnp.float32),    # running sum l
            pltpu.VMEM((K, L), jnp.float32),    # weighted-feature accumulator
        ],
        compiler_params=pltpu.CompilerParams(
            dimension_semantics=("parallel", "arbitrary"),
            vmem_limit_bytes=vmem_limit,
        ),
        cost_estimate=cost,
    )(x, *w_arrays)

    # Tiny epilogue (K*L values): merge per-split online-softmax partials and
    # apply the 1-fc classifier as plain XLA ops.
    m_g = jnp.max(m_p, axis=0)                                # (1, K)
    w = jnp.exp(m_p - m_g)                                    # (S, 1, K)
    l = jnp.sum(l_p * w, axis=0)                              # (1, K)
    acc = jnp.sum(acc_p * jnp.swapaxes(w, 1, 2), axis=0)      # (K, L)
    afeat = acc / jnp.transpose(l)                            # (K, L)
    return afeat @ wc + bc                                    # (K, C)


def init_params(key, L=32, D=16, K=1, num_cls=2):
    """Deterministic xavier-normal-ish init (biases zero).

    wv/wu/wc stored pre-transposed as (in, out); ww stored torch-native (K, D)
    so the kernel can use it directly as a lane-aligned row.
    """
    k1, k2, k3, k4 = jax.random.split(key, 4)

    def xavier(k, shape, fan_in, fan_out):
        std = (2.0 / (fan_in + fan_out)) ** 0.5
        return std * jax.random.normal(k, shape, dtype=jnp.float32)

    return {
        "wv": xavier(k1, (L, D), L, D), "bv": jnp.zeros((1, D), jnp.float32),
        "wu": xavier(k2, (L, D), L, D), "bu": jnp.zeros((1, D), jnp.float32),
        "ww": xavier(k3, (K, D), D, K), "bw": jnp.zeros((1, K), jnp.float32),
        "wc": xavier(k4, (L, num_cls), L, num_cls),
        "bc": jnp.zeros((1, num_cls), jnp.float32),
    }


def reference(x, p):
    x = x.astype(jnp.float32)
    a_v = jnp.tanh(x @ p["wv"] + p["bv"])
    a_u = jax.nn.sigmoid(x @ p["wu"] + p["bu"])
    a = (a_v * a_u) @ p["ww"].T + p["bw"]        # (N, K)
    a = jax.nn.softmax(a.T, axis=1)              # (K, N)
    afeat = a @ x                                # (K, L)
    return afeat @ p["wc"] + p["bc"]             # (K, C)


if __name__ == "__main__":
    # Small shapes (module defaults are L=512, D=128, K=1, num_cls=2).
    N, L, D, K, C = 36, 32, 16, 1, 2
    key = jax.random.PRNGKey(0)
    kx, kp = jax.random.split(key)
    x = jax.random.normal(kx, (N, L), dtype=jnp.float32)
    params = init_params(kp, L=L, D=D, K=K, num_cls=C)
    ref = reference(x, params)

    # f32, tile_n=16 -> grid (2 splits x 2 tiles): last real tile partially
    # masked, split 1 also processes one fully-masked duplicate tile.
    pred = jax.block_until_ready(attention_with_classifier(x, params, tile_n=16))
    assert pred.shape == (K, C)
    assert jnp.allclose(pred, ref, atol=2e-4, rtol=2e-4), (pred, ref)

    # Auto tile / auto split (collapses to a single tile, single split here).
    pred_auto = jax.block_until_ready(attention_with_classifier(x, params))
    assert jnp.allclose(pred_auto, ref, atol=2e-4, rtol=2e-4), (pred_auto, ref)

    # bf16 activation fast path: bf16 x and bf16 gating weights feed the MXU.
    x_bf16 = x.astype(jnp.bfloat16)
    pred_bf16 = jax.block_until_ready(
        attention_with_classifier(x_bf16, params, tile_n=16))
    ref_bf16 = reference(x_bf16.astype(jnp.float32), params)
    assert jnp.allclose(pred_bf16, ref_bf16, atol=2e-2, rtol=2e-2), (pred_bf16, ref_bf16)

    # Fused V/U projection path (active when D % 128 == 0).
    params128 = init_params(kp, L=L, D=128, K=K, num_cls=C)
    pred128 = jax.block_until_ready(
        attention_with_classifier(x, params128, tile_n=16))
    ref128 = reference(x, params128)
    assert jnp.allclose(pred128, ref128, atol=2e-4, rtol=2e-4), (pred128, ref128)

    print("KERNEL_OK")
</pallas_src>

<mosaic_0001>
module attributes {stable_mosaic.version = 11 : i64} {
  func.func @kernel(%arg0: i32, %arg1: i32, %arg2: memref<16x32xf32, #tpu.memory_space<vmem>>, %arg3: memref<32x16xf32, #tpu.memory_space<vmem>>, %arg4: memref<1x16xf32, #tpu.memory_space<vmem>>, %arg5: memref<32x16xf32, #tpu.memory_space<vmem>>, %arg6: memref<1x16xf32, #tpu.memory_space<vmem>>, %arg7: memref<1x16xf32, #tpu.memory_space<vmem>>, %arg8: memref<1x1xf32, #tpu.memory_space<vmem>>, %arg9: memref<1x1x1xf32, #tpu.memory_space<vmem>>, %arg10: memref<1x1x1xf32, #tpu.memory_space<vmem>>, %arg11: memref<1x1x32xf32, #tpu.memory_space<vmem>>, %arg12: memref<1x1xf32, #tpu.memory_space<vmem>>, %arg13: memref<1x1xf32, #tpu.memory_space<vmem>>, %arg14: memref<1x32xf32, #tpu.memory_space<vmem>>) attributes {dimension_semantics = [#tpu.dimension_semantics<parallel>, #tpu.dimension_semantics<arbitrary>], iteration_bounds = array<i64: 2, 2>, scalar_prefetch = 0 : i64, scratch_operands = 3 : i64, tpu.core_type = #tpu.core_type<tc>, window_params = [{transform_indices = @transform_0, window_bounds = array<i64: 16, 32>}, {pipeline_mode = #tpu.pipeline_mode<synchronous>, transform_indices = @transform_1, window_bounds = array<i64: 32, 16>}, {pipeline_mode = #tpu.pipeline_mode<synchronous>, transform_indices = @transform_2, window_bounds = array<i64: 1, 16>}, {pipeline_mode = #tpu.pipeline_mode<synchronous>, transform_indices = @transform_3, window_bounds = array<i64: 32, 16>}, {pipeline_mode = #tpu.pipeline_mode<synchronous>, transform_indices = @transform_4, window_bounds = array<i64: 1, 16>}, {pipeline_mode = #tpu.pipeline_mode<synchronous>, transform_indices = @transform_5, window_bounds = array<i64: 1, 16>}, {pipeline_mode = #tpu.pipeline_mode<synchronous>, transform_indices = @transform_6, window_bounds = array<i64: 1, 1>}, {transform_indices = @transform_7, window_bounds = array<i64: 1, 1, 1>}, {transform_indices = @transform_8, window_bounds = array<i64: 1, 1, 1>}, {transform_indices = @transform_9, window_bounds = array<i64: 1, 1, 32>}]} {
    %c0_i32 = arith.constant 0 : i32
    %0 = arith.cmpi eq, %arg1, %c0_i32 : i32
    %1 = arith.extui %0 : i1 to i32
    %c0_i32_0 = arith.constant 0 : i32
    %2 = arith.cmpi ne, %1, %c0_i32_0 : i32
    scf.if %2 {
      %cst_35 = arith.constant -1.000000e+30 : f32
      %71 = vector.broadcast %cst_35 : f32 to vector<1x1xf32>
      %c0_36 = arith.constant 0 : index
      %c0_37 = arith.constant 0 : index
      %72 = vector.load %arg12[%c0_36, %c0_37] : memref<1x1xf32, #tpu.memory_space<vmem>>, vector<1x1xf32>
      tpu.vector_store %arg12[%c0_36, %c0_37], %71 {strides = array<i32>} : memref<1x1xf32, #tpu.memory_space<vmem>>, vector<1x1xf32>,
      %cst_38 = arith.constant 0.000000e+00 : f32
      %73 = vector.broadcast %cst_38 : f32 to vector<1x1xf32>
      %c0_39 = arith.constant 0 : index
      %c0_40 = arith.constant 0 : index
      %74 = vector.load %arg13[%c0_39, %c0_40] : memref<1x1xf32, #tpu.memory_space<vmem>>, vector<1x1xf32>
      tpu.vector_store %arg13[%c0_39, %c0_40], %73 {strides = array<i32>} : memref<1x1xf32, #tpu.memory_space<vmem>>, vector<1x1xf32>,
      %cst_41 = arith.constant 0.000000e+00 : f32
      %75 = vector.broadcast %cst_41 : f32 to vector<1x32xf32>
      %c0_42 = arith.constant 0 : index
      %c0_43 = arith.constant 0 : index
      %76 = vector.load %arg14[%c0_42, %c0_43] : memref<1x32xf32, #tpu.memory_space<vmem>>, vector<1x32xf32>
      tpu.vector_store %arg14[%c0_42, %c0_43], %75 {strides = array<i32>} : memref<1x32xf32, #tpu.memory_space<vmem>>, vector<1x32xf32>,
    } else {
    }
    %c0 = arith.constant 0 : index
    %c0_1 = arith.constant 0 : index
    %3 = vector.load %arg2[%c0, %c0_1] : memref<16x32xf32, #tpu.memory_space<vmem>>, vector<16x32xf32>
    %c2_i32 = arith.constant 2 : i32
    %4 = arith.muli %arg0, %c2_i32 : i32
    %5 = arith.addi %4, %arg1 : i32
    %6 = tpu.iota {dimensions = array<i32: 0>} : vector<16x1xi32>
    %c16_i32 = arith.constant 16 : i32
    %7 = arith.muli %5, %c16_i32 : i32
    %8 = vector.broadcast %7 : i32 to vector<16x1xi32>
    %9 = arith.addi %6, %8 : vector<16x1xi32>
    %c36_i32 = arith.constant 36 : i32
    %10 = vector.broadcast %c36_i32 : i32 to vector<16x1xi32>
    %11 = arith.cmpi slt, %9, %10 : vector<16x1xi32>
    %cst = arith.constant 0.000000e+00 : f32
    %12 = vector.shape_cast %11 : vector<16x1xi1> to vector<16x1xi1>
    %13 = vector.broadcast %12 : vector<16x1xi1> to vector<16x32xi1>
    %14 = vector.broadcast %cst : f32 to vector<16x32xf32>
    %15 = arith.select %13, %3, %14 : vector<16x32xi1>, vector<16x32xf32>
    %c0_2 = arith.constant 0 : index
    %c0_3 = arith.constant 0 : index
    %16 = vector.load %arg3[%c0_2, %c0_3] : memref<32x16xf32, #tpu.memory_space<vmem>>, vector<32x16xf32>
    %cst_4 = arith.constant dense<0.000000e+00> : vector<16x16xf32>
    %17 = tpu.matmul %15, %16, %cst_4 {dimension_numbers = #tpu.dot_dimension_numbers<[1], [0], [0], [1], [0, 0, 1, 1], [], []>} : vector<16x32xf32>, vector<32x16xf32>, vector<16x16xf32> -> vector<16x16xf32>
    %c0_5 = arith.constant 0 : index
    %c0_6 = arith.constant 0 : index
    %18 = vector.load %arg4[%c0_5, %c0_6] : memref<1x16xf32, #tpu.memory_space<vmem>>, vector<1x16xf32>
    %19 = vector.broadcast %18 : vector<1x16xf32> to vector<16x16xf32>
    %20 = arith.addf %17, %19 : vector<16x16xf32>
    %21 = math.tanh %20 : vector<16x16xf32>
    %c0_7 = arith.constant 0 : index
    %c0_8 = arith.constant 0 : index
    %22 = vector.load %arg5[%c0_7, %c0_8] : memref<32x16xf32, #tpu.memory_space<vmem>>, vector<32x16xf32>
    %cst_9 = arith.constant dense<0.000000e+00> : vector<16x16xf32>
    %23 = tpu.matmul %15, %22, %cst_9 {dimension_numbers = #tpu.dot_dimension_numbers<[1], [0], [0], [1], [0, 0, 1, 1], [], []>} : vector<16x32xf32>, vector<32x16xf32>, vector<16x16xf32> -> vector<16x16xf32>
    %c0_10 = arith.constant 0 : index
    %c0_11 = arith.constant 0 : index
    %24 = vector.load %arg6[%c0_10, %c0_11] : memref<1x16xf32, #tpu.memory_space<vmem>>, vector<1x16xf32>
    %25 = vector.broadcast %24 : vector<1x16xf32> to vector<16x16xf32>
    %26 = arith.addf %23, %25 : vector<16x16xf32>
    %27 = arith.negf %26 : vector<16x16xf32>
    %28 = math.exp %27 : vector<16x16xf32>
    %cst_12 = arith.constant 1.000000e+00 : f32
    %29 = vector.broadcast %cst_12 : f32 to vector<16x16xf32>
    %30 = arith.addf %29, %28 : vector<16x16xf32>
    %31 = arith.divf %29, %30 : vector<16x16xf32>
    %32 = arith.mulf %21, %31 : vector<16x16xf32>
    %c0_13 = arith.constant 0 : index
    %c0_14 = arith.constant 0 : index
    %33 = vector.load %arg7[%c0_13, %c0_14] : memref<1x16xf32, #tpu.memory_space<vmem>>, vector<1x16xf32>
    %34 = vector.broadcast %33 : vector<1x16xf32> to vector<16x16xf32>
    %35 = arith.mulf %32, %34 : vector<16x16xf32>
    %cst_15 = arith.constant dense<0.000000e+00> : vector<16xf32>
    %36 = vector.multi_reduction <add>, %35, %cst_15 [1] : vector<16x16xf32> to vector<16xf32>
    %37 = vector.shape_cast %36 : vector<16xf32> to vector<16x1xf32>
    %c0_16 = arith.constant 0 : index
    %c0_17 = arith.constant 0 : index
    %38 = vector.load %arg8[%c0_16, %c0_17] : memref<1x1xf32, #tpu.memory_space<vmem>>, vector<1x1xf32>
    %39 = vector.broadcast %38 : vector<1x1xf32> to vector<16x1xf32>
    %40 = arith.addf %37, %39 : vector<16x1xf32>
    %cst_18 = arith.constant -1.000000e+30 : f32
    %41 = vector.broadcast %cst_18 : f32 to vector<16x1xf32>
    %42 = arith.select %11, %40, %41 : vector<16x1xi1>, vector<16x1xf32>
    %c0_19 = arith.constant 0 : index
    %c0_20 = arith.constant 0 : index
    %43 = vector.load %arg12[%c0_19, %c0_20] : memref<1x1xf32, #tpu.memory_space<vmem>>, vector<1x1xf32>
    %cst_21 = arith.constant dense<0xFF800000> : vector<1xf32>
    %44 = vector.multi_reduction <maximumf>, %42, %cst_21 [0] : vector<16x1xf32> to vector<1xf32>
    %45 = vector.shape_cast %44 : vector<1xf32> to vector<1x1xf32>
    %46 = arith.maximumf %43, %45 : vector<1x1xf32>
    %47 = arith.subf %43, %46 : vector<1x1xf32>
    %48 = math.exp %47 : vector<1x1xf32>
    %49 = vector.broadcast %46 : vector<1x1xf32> to vector<16x1xf32>
    %50 = arith.subf %42, %49 : vector<16x1xf32>
    %51 = math.exp %50 : vector<16x1xf32>
    %c0_22 = arith.constant 0 : index
    %c0_23 = arith.constant 0 : index
    %52 = vector.load %arg13[%c0_22, %c0_23] : memref<1x1xf32, #tpu.memory_space<vmem>>, vector<1x1xf32>
    %53 = arith.mulf %48, %52 : vector<1x1xf32>
    %cst_24 = arith.constant dense<0.000000e+00> : vector<1xf32>
    %54 = vector.multi_reduction <add>, %51, %cst_24 [0] : vector<16x1xf32> to vector<1xf32>
    %55 = vector.shape_cast %54 : vector<1xf32> to vector<1x1xf32>
    %56 = arith.addf %53, %55 : vector<1x1xf32>
    %c0_25 = arith.constant 0 : index
    %c0_26 = arith.constant 0 : index
    %57 = vector.load %arg13[%c0_25, %c0_26] : memref<1x1xf32, #tpu.memory_space<vmem>>, vector<1x1xf32>
    tpu.vector_store %arg13[%c0_25, %c0_26], %56 {strides = array<i32>} : memref<1x1xf32, #tpu.memory_space<vmem>>, vector<1x1xf32>,
    %58 = vector.broadcast %51 : vector<16x1xf32> to vector<16x32xf32>
    %59 = arith.mulf %58, %15 : vector<16x32xf32>
    %cst_27 = arith.constant dense<0.000000e+00> : vector<32xf32>
    %60 = vector.multi_reduction <add>, %59, %cst_27 [0] : vector<16x32xf32> to vector<32xf32>
    %61 = vector.shape_cast %60 : vector<32xf32> to vector<1x32xf32>
    %c0_28 = arith.constant 0 : index
    %c0_29 = arith.constant 0 : index
    %62 = vector.load %arg14[%c0_28, %c0_29] : memref<1x32xf32, #tpu.memory_space<vmem>>, vector<1x32xf32>
    %63 = vector.broadcast %48 : vector<1x1xf32> to vector<1x32xf32>
    %64 = arith.mulf %63, %62 : vector<1x32xf32>
    %65 = arith.addf %64, %61 : vector<1x32xf32>
    %c0_30 = arith.constant 0 : index
    %c0_31 = arith.constant 0 : index
    %66 = vector.load %arg14[%c0_30, %c0_31] : memref<1x32xf32, #tpu.memory_space<vmem>>, vector<1x32xf32>
    tpu.vector_store %arg14[%c0_30, %c0_31], %65 {strides = array<i32>} : memref<1x32xf32, #tpu.memory_space<vmem>>, vector<1x32xf32>,
    %c0_32 = arith.constant 0 : index
    %c0_33 = arith.constant 0 : index
    %67 = vector.load %arg12[%c0_32, %c0_33] : memref<1x1xf32, #tpu.memory_space<vmem>>, vector<1x1xf32>
    tpu.vector_store %arg12[%c0_32, %c0_33], %46 {strides = array<i32>} : memref<1x1xf32, #tpu.memory_space<vmem>>, vector<1x1xf32>,
    %c1_i32 = arith.constant 1 : i32
    %68 = arith.cmpi eq, %arg1, %c1_i32 : i32
    %69 = arith.extui %68 : i1 to i32
    %c0_i32_34 = arith.constant 0 : i32
    %70 = arith.cmpi ne, %69, %c0_i32_34 : i32
    scf.if %70 {
      %c0_35 = arith.constant 0 : index
      %c0_36 = arith.constant 0 : index
      %71 = vector.load %arg12[%c0_35, %c0_36] : memref<1x1xf32, #tpu.memory_space<vmem>>, vector<1x1xf32>
      %c0_37 = arith.constant 0 : index
      %c0_38 = arith.constant 0 : index
      %c0_39 = arith.constant 0 : index
      %72 = vector.load %arg9[%c0_37, %c0_38, %c0_39] : memref<1x1x1xf32, #tpu.memory_space<vmem>>, vector<1x1x1xf32>
      %73 = vector.shape_cast %72 : vector<1x1x1xf32> to vector<1x1xf32>
      %74 = vector.shape_cast %71 : vector<1x1xf32> to vector<1x1x1xf32>
      tpu.vector_store %arg9[%c0_37, %c0_38, %c0_39], %74 {strides = array<i32>} : memref<1x1x1xf32, #tpu.memory_space<vmem>>, vector<1x1x1xf32>,
      %c0_40 = arith.constant 0 : index
      %c0_41 = arith.constant 0 : index
      %75 = vector.load %arg13[%c0_40, %c0_41] : memref<1x1xf32, #tpu.memory_space<vmem>>, vector<1x1xf32>
      %c0_42 = arith.constant 0 : index
      %c0_43 = arith.constant 0 : index
      %c0_44 = arith.constant 0 : index
      %76 = vector.load %arg10[%c0_42, %c0_43, %c0_44] : memref<1x1x1xf32, #tpu.memory_space<vmem>>, vector<1x1x1xf32>
      %77 = vector.shape_cast %76 : vector<1x1x1xf32> to vector<1x1xf32>
      %78 = vector.shape_cast %75 : vector<1x1xf32> to vector<1x1x1xf32>
      tpu.vector_store %arg10[%c0_42, %c0_43, %c0_44], %78 {strides = array<i32>} : memref<1x1x1xf32, #tpu.memory_space<vmem>>, vector<1x1x1xf32>,
      %c0_45 = arith.constant 0 : index
      %c0_46 = arith.constant 0 : index
      %79 = vector.load %arg14[%c0_45, %c0_46] : memref<1x32xf32, #tpu.memory_space<vmem>>, vector<1x32xf32>
      %c0_47 = arith.constant 0 : index
      %c0_48 = arith.constant 0 : index
      %c0_49 = arith.constant 0 : index
      %80 = vector.load %arg11[%c0_47, %c0_48, %c0_49] : memref<1x1x32xf32, #tpu.memory_space<vmem>>, vector<1x1x32xf32>
      %81 = vector.shape_cast %80 : vector<1x1x32xf32> to vector<1x32xf32>
      %82 = vector.shape_cast %79 : vector<1x32xf32> to vector<1x1x32xf32>
      tpu.vector_store %arg11[%c0_47, %c0_48, %c0_49], %82 {strides = array<i32>} : memref<1x1x32xf32, #tpu.memory_space<vmem>>, vector<1x1x32xf32>,
    } else {
    }
    return
  }
  func.func @transform_0(%arg0: i32, %arg1: i32) -> (i32, i32) {
    %c2_i32 = arith.constant 2 : i32
    %0 = arith.muli %arg0, %c2_i32 : i32
    %1 = arith.addi %0, %arg1 : i32
    %c2_i32_0 = arith.constant 2 : i32
    %2 = arith.minsi %1, %c2_i32_0 : i32
    %c0_i32 = arith.constant 0 : i32
    %c0_i32_1 = arith.constant 0 : i32
    return %2, %c0_i32 : i32, i32
  }
  func.func @transform_1(%arg0: i32, %arg1: i32) -> (i32, i32) {
    %c0_i32 = arith.constant 0 : i32
    %c0_i32_0 = arith.constant 0 : i32
    %c0_i32_1 = arith.constant 0 : i32
    return %c0_i32, %c0_i32_0 : i32, i32
  }
  func.func @transform_2(%arg0: i32, %arg1: i32) -> (i32, i32) {
    %c0_i32 = arith.constant 0 : i32
    %c0_i32_0 = arith.constant 0 : i32
    %c0_i32_1 = arith.constant 0 : i32
    return %c0_i32, %c0_i32_0 : i32, i32
  }
  func.func @transform_3(%arg0: i32, %arg1: i32) -> (i32, i32) {
    %c0_i32 = arith.constant 0 : i32
    %c0_i32_0 = arith.constant 0 : i32
    %c0_i32_1 = arith.constant 0 : i32
    return %c0_i32, %c0_i32_0 : i32, i32
  }
  func.func @transform_4(%arg0: i32, %arg1: i32) -> (i32, i32) {
    %c0_i32 = arith.constant 0 : i32
    %c0_i32_0 = arith.constant 0 : i32
    %c0_i32_1 = arith.constant 0 : i32
    return %c0_i32, %c0_i32_0 : i32, i32
  }
  func.func @transform_5(%arg0: i32, %arg1: i32) -> (i32, i32) {
    %c0_i32 = arith.constant 0 : i32
    %c0_i32_0 = arith.constant 0 : i32
    %c0_i32_1 = arith.constant 0 : i32
    return %c0_i32, %c0_i32_0 : i32, i32
  }
  func.func @transform_6(%arg0: i32, %arg1: i32) -> (i32, i32) {
    %c0_i32 = arith.constant 0 : i32
    %c0_i32_0 = arith.constant 0 : i32
    %c0_i32_1 = arith.constant 0 : i32
    return %c0_i32, %c0_i32_0 : i32, i32
  }
  func.func @transform_7(%arg0: i32, %arg1: i32) -> (i32, i32, i32) {
    %c0_i32 = arith.constant 0 : i32
    %c0_i32_0 = arith.constant 0 : i32
    %c0_i32_1 = arith.constant 0 : i32
    return %arg0, %c0_i32, %c0_i32_0 : i32, i32, i32
  }
  func.func @transform_8(%arg0: i32, %arg1: i32) -> (i32, i32, i32) {
    %c0_i32 = arith.constant 0 : i32
    %c0_i32_0 = arith.constant 0 : i32
    %c0_i32_1 = arith.constant 0 : i32
    return %arg0, %c0_i32, %c0_i32_0 : i32, i32, i32
  }
  func.func @transform_9(%arg0: i32, %arg1: i32) -> (i32, i32, i32) {
    %c0_i32 = arith.constant 0 : i32
    %c0_i32_0 = arith.constant 0 : i32
    %c0_i32_1 = arith.constant 0 : i32
    return %arg0, %c0_i32, %c0_i32_0 : i32, i32, i32
  }
}

</mosaic_0001>

<bundles_post_ra>
// kernel: tpu_custom_call.1
= control target key start
LH: loop header
LB: loop body
LE: loop exit
PB: predicated region body
PF: predicated region fallthrough
CT: control target
= control target key end

     0   :  { %s1439_s0 = inlined_call_operand.vmem [shape: f32[36,32], index: 0, kind: input, shape index: {}]   ;;  %s1440_s1 = inlined_call_operand.vmem [shape: f32[32,16], index: 1, kind: input, shape index: {}]   ;;  %s1441_s2 = inlined_call_operand.vmem [shape: f32[1,16], index: 2, kind: input, shape index: {}]   ;;  %s1442_s3 = inlined_call_operand.vmem [shape: f32[32,16], index: 3, kind: input, shape index: {}]   ;;  %s1443_s4 = inlined_call_operand.vmem [shape: f32[1,16], index: 4, kind: input, shape index: {}]   ;;  %s1444_s5 = inlined_call_operand.vmem [shape: f32[1,16], index: 5, kind: input, shape index: {}]   ;;  %s1445_s6 = inlined_call_operand.<no memory space> [shape: f32[1,1], index: 6, kind: input, shape index: {}]   ;;  %s1446_s7 = inlined_call_operand.vmem [shape: f32[2,1,1], index: 7, kind: output, shape index: {0}]   ;;  %s1447_s8 = inlined_call_operand.vmem [shape: f32[2,1,1], index: 8, kind: output, shape index: {1}]   ;;  %s1448_s9 = inlined_call_operand.hbm [shape: f32[2,1,32], index: 9, kind: output, shape index: {2}]  }
   0x1   :  { %v15_v0 = vstv %s1445_s6 }
   0x2   :  { %16 = vst [vmem:[#allocation5] sm:$0x1] %v15_v0 }
   0x3   :  { %17 = vsyncpa [#allocation7], 0 }
   0x4   :  { %19 = vsyncpa [#allocation7 + $0x1], 0  ;;  %s1201_s11 = smov 0   ;;  %s1203_s12 = smov 0  }
   0x5   :  { %s1205_s13 = smov 0   ;;  %s1207_s14 = smov 0  }
   0x6   :  { %s1209_s15 = smov 0   ;;  %s1211_s16 = smov 0  }
   0x7   :  { %s1213_s17 = smov 0   ;;  %s1215_s18 = smov 0  }
   0x8 LB: > { %1454 = sst [smem:[#allocation9_spill]] %s1122_s13  ;;  %s877_s6 = sadd.s32 4294967295, %s1142_s18   ;;  %s1142_s18 = sphi %s1215_s18, %s25_s18   ;;  %s1138_s17 = sphi %s1213_s17, %s1471_s17   ;;  %s1134_s16 = sphi %s1211_s16, %s1470_s16   ;;  %s1130_s15 = sphi %s1209_s15, %s1469_s15   ;;  %s1126_s14 = sphi %s1207_s14, %s1468_s14   ;;  %s1122_s13 = sphi %s1205_s13, %s1467_s13   ;;  %s1118_s12 = sphi %s1203_s12, %s1473_s12   ;;  %s1114_s11 = sphi %s1201_s11, %s1472_s11  }
   0x9   : > { %1455 = sst [smem:[#allocation10_spill]] %s1134_s16  ;;  %s878_s19 = sadd.s32 4294967294, %s1142_s18  }
   0xa   : > { %1456 = sst [smem:[#allocation11_spill]] %s1138_s17  ;;  %s34_s20 = sadd.s32 1, %s1134_s16 }
   0xb   : > { %p35_p0 = scmp.ge.s32.totalorder %s34_s20, 2  ;;  %s37_s21 = sadd.s32 1, %s1138_s17 }
   0xc   : > { %p266_p1 = scmp.ne.s32.totalorder %s1122_s13, %s1118_s12  ;;  %p267_p2 = scmp.eq.s32.totalorder %s877_s6, 3 }
   0xd   : > { %s1475_s20 = smov (%p35_p0, %s34_s20), 0  ;;  %s1477_s21 = smov (!%p35_p0, %s37_s21), %s1138_s17 }
   0xe   : > { %1457 = sst [smem:[#allocation12_spill]] %s1475_s20  ;;  %p1250_p3 = por %p267_p2, %p266_p1 }
   0xf   : > { %p272_p4 = scmp.ne.s32.totalorder %s1118_s12, %s1114_s11  ;;  %p39_p5 = scmp.ge.s32.totalorder %s1477_s21, 2 }
  0x10   : > { %p273_p6 = scmp.eq.s32.totalorder %s878_s19, 3  ;;  %p883_p7 = scmp.ge.s32.totalorder %s1142_s18, 1 }
  0x11   : > { %p334_p8 = scmp.lt.s32.totalorder %s1142_s18, 5  ;;  %s1479_s21 = smov (%p39_p5, %s1477_s21), 0 }
  0x12   : > { %1459 = sst [smem:[#allocation13_spill]] %s1479_s21  ;;  %p1260_p9 = por %p273_p6, %p272_p4 }
  0x13   : > { %p335_p10 = pnand %p883_p7, %p334_p8  ;;  %s253_s24 = ssub.s32 %s1138_s17, %s1479_s21 }
  0x14   : > { %s1460_s23 = scalar_select %p1260_p9, 1, 0 }
  0x15   : > { %s256_s25 = sadd.s32 1, %s1122_s13  ;;  %p254_p11 = scmp.eq.s32.totalorder %s253_s24, 0 }
  0x16   : > { %1461 = sst [smem:[#allocation14_spill]] %s1460_s23  ;;  %338 = sbr.rel (%p335_p10) target bundleno = 663 (0x297), region = 48 }
  0x17   : > { %s1268_s26 = scalar_select %p254_p11, %s1122_s13, %s256_s25  }
  0x18   : > { %s884_s28 = sshll.u32 (!%p335_p10), %s1130_s15, 1  ;;  %p405_p13 = scmp.lt.s32.totalorder (!%p335_p10), %s1130_s15, 1 }
  0x19   : > { %1462 = sst [smem:[#allocation15_spill]] %s1268_s26  ;;  %s1273_s29 = sadd.s32 (!%p335_p10), %s1126_s14, %s884_s28 }
  0x1a   : > { %p385_p12 = scmp.lt.s32.totalorder (!%p335_p10), %s1273_s29, 2  ;;  %s1463_s13 = sand.u32 (!%p335_p10), 1, %s1118_s12  }
  0x1b   : > { %s1296_s23 = scalar_lea.vmem (!%p335_p10), [#allocation6], %s1463_s13  ;;  %p887_p1 = scmp.ne.s32.totalorder (!%p335_p10), %s1126_s14, 0 }
  0x1d   : > { %s386_s30 = scalar_select %p385_p12, %s1273_s29, 2 }
  0x1e   : > { %s1279_s10 = scalar_select %p405_p13, %s1130_s15, 1 }
  0x1f   : > { %s885_s6 = sshll.u32 %s386_s30, 1  ;;  %414 = sbr.rel (%p887_p1) target bundleno = 38 (0x26), region = 52  ;;  %vm415_vm0 = vcmask (!%p887_p1), 0   ;;  %vm418_vm1 = vcmask (!%p887_p1), 253952   ;;  %v1144_v1 = vmov (!%p887_p1), -1e+30  }
  0x20   : > { %p392_p0 = scmp.lt.s32.totalorder %s885_s6, 4  ;;  %s407_s25 = scalar_lea.vmem %s1446_s7, %s1279_s10  ;;  %416 = vst.msk [vmem:[#allocation2] sm:$0x1] (!%p887_p1), %vm415_vm0, %v1144_v1  ;;  %v1145_v2 = vmov (!%p887_p1), 0.0  }
  0x21   : > { %s410_s28 = scalar_lea.vmem %s1447_s8, %s1279_s10  ;;  %417 = vst.msk [vmem:[#allocation3] sm:$0x1] (!%p887_p1), %vm415_vm0, %v1145_v2 }
  0x22   : > { %s1481_s6 = smov (!%p392_p0, %s885_s6), 4  ;;  %419 = vst.msk [vmem:[#allocation4] sm:$0x1] (!%p887_p1), %vm418_vm1, %v1145_v2 }
  0x23   : > { %s886_s20 = sshll.u32 %s1481_s6, 3 }
  0x24   : > { %s1292_s26 = scalar_lea.vmem %s1439_s0, %s886_s20 }
  0x26 PF: > { %v534_v3 = vld [vmem:[%s1442_s3] sm:$0xff]  ;;  %v535_v4 = vld [vmem:[%s1442_s3 + $0x8] sm:$0xff]  ;;  %v536_v5 = vld [vmem:[%s1442_s3 + $0x10] sm:$0xff]  ;;  %v424_v6 = vlaneseq  ;;  %s889_s30 = sshll.u32 %s1273_s29, 4  ;;  %vm450_vm2 = vcmask 261120   ;;  %vm643_vm5 = vcmask 130048  }
  0x27   : > { %v946_v7 = vpack.c.bf16 %v535_v4, %v534_v3  ;;  %v537_v8 = vld [vmem:[%s1442_s3 + $0x18] sm:$0xff]  ;;  %v428_v9 = vstv %s889_s30  ;;  %v439_v12 = vld [vmem:[%s1440_s1] sm:$0xff]  ;;  %v440_v13 = vld [vmem:[%s1440_s1 + $0x8] sm:$0xff]  ;;  %v1146_v52 = vmov 0   ;;  %vm662_vm6 = vcmask 7168   ;;  %p900_p2 = scmp.ne.s32.totalorder %s1126_s14, 1 }
  0x28   : > { %v950_v10 = vpack.c.bf16 %v537_v8, %v536_v5  ;;  %v1312_v11 = vshrl.u32 %v424_v6, 7  ;;  %v441_v14 = vld [vmem:[%s1440_s1 + $0x10] sm:$0xff]  ;;  %v938_v15 = vpack.c.bf16 %v440_v13, %v439_v12  ;;  %v442_v16 = vld [vmem:[%s1440_s1 + $0x18] sm:$0xff]  ;;  %v420_v17 = vld [vmem:[%s1292_s26] sm:$0xff]  ;;  %1029 = vset.pattern.permute.xlu0 %v1146_v52  ;;  %1028 = vset.pattern.permute.xlu1 %v1146_v52  ;;  %vm700_vm7 = vcmask 0  }
  0x29   : > { %947 = vmatprep.subr.bf16.mxu1 %v946_v7  ;;  %v942_v20 = vpack.c.bf16 %v442_v16, %v441_v14  ;;  %v421_v21 = vld [vmem:[%s1292_s26 + $0x8] sm:$0xff]  ;;  %v893_v25 = vld [vmem:[%s1443_s4] ss:$0 sm:$0xff]  ;;  %v899_v53 = vld [vmem:[#allocation5] ss:$0 sm:$0xff]  ;;  %vm735_vm8 = vcmask 253952  }
  0x2a   : > { %949 = vmatpush3.bf16.msra.mxu1 %v946_v7  ;;  %v1328_v18 = vadd.s32 %v428_v9, %v1312_v11  ;;  %v426_v19 = vadd.s32 8, %v1312_v11  ;;  %939 = vmatprep.subr.bf16.mxu0 %v938_v15  ;;  %v890_v34 = vld [vmem:[%s1441_s2] ss:$0 sm:$0xff]  ;;  %v679_v5 = vsub.s32 0, %v1312_v11 }
  0x2b   : > { %951 = vmatprep.subr.bf16.mxu1 %v950_v10  ;;  %941 = vmatpush3.bf16.msra.mxu0 %v938_v15  ;;  %v898_v45 = vld [vmem:[%s1444_s5] ss:$0 sm:$0xff] }
  0x2c   : > { %vm431_vm3 = vcmp.lt.s32.totalorder %v1328_v18, 36  ;;  %v430_v22 = vadd.s32 %v428_v9, %v426_v19  ;;  %943 = vmatprep.subr.bf16.mxu0 %v942_v20  ;;  %v661_v4 = vld [vmem:[#allocation2] sm:$0x1] }
  0x2d   : > { %v1335_v23 = vsel %vm431_vm3, %v420_v17, 0.0 }
  0x2e   : > { %953 = vmatpush3.bf16.msra.mxu1 %v950_v10  ;;  %935 = vmatprep.mubr.msk.f32.mxu1 %vm450_vm2, %v1335_v23  ;;  %vm432_vm4 = vcmp.lt.s32.totalorder %v430_v22, 36 }
  0x2f   : > { %v1340_v24 = vsel %vm432_vm4, %v421_v21, 0.0  ;;  %924 = vmatprep.mubr.msk.f32.mxu0 %vm450_vm2, %v1335_v23  ;;  %945 = vmatpush3.bf16.msra.mxu0 %v942_v20 }
  0x31   : > { %936 = vmatmul.mubr.msk.f32.vlgmr.msra.gmra.mrb[0].mxu1 %vm450_vm2, %v1340_v24 }
  0x32   : > { %925 = vmatmul.mubr.msk.f32.vlgmr.msra.gmra.mrb[0].mxu0 %vm450_vm2, %v1340_v24 }
 0x104   : > { %v937_v26 = vpop.f32.mrb[0].mxu1 }
 0x105   : > { %v617_v27 = vadd.f32 %v937_v26, %v893_v25  ;;  %v611_v28 = vpop.f32.mrb[1].mxu1  ;;  %v926_v30 = vpop.f32.mrb[0].mxu0 }
 0x106   : > { %v612_v29 = vadd.f32 %v893_v25, %v611_v28  ;;  %v523_v32 = vpop.f32.mrb[1].mxu0  ;;  %v529_v35 = vadd.f32 %v926_v30, %v890_v34 }
 0x107   : > { %v897_v31 = vmul.f32 -1.442695, %v617_v27  ;;  %v524_v36 = vadd.f32 %v890_v34, %v523_v32  ;;  %v688_v27 = vld [vmem:[#allocation3] sm:$0x1] }
 0x108   : > { %v896_v33 = vmul.f32 -1.442695, %v612_v29 }
 0x109   : > { %1030 = vpow2.f32 %v897_v31 }
 0x10a   : > { %1032 = vpow2.f32 %v896_v33 }
 0x10b   : > { %1034 = vtanh.f32 %v529_v35 }
 0x10c   : > { %1036 = vtanh.f32 %v524_v36 }
 0x113   : > { %v1031_v37 = vpop.eup %1030 }
 0x114   : > { %v1033_v38 = vpop.eup %1032  ;;  %v627_v39 = vadd.f32 1.0, %v1031_v37 }
 0x115   : > { %v626_v40 = vadd.f32 1.0, %v1033_v38  ;;  %v1035_v41 = vpop.eup %1034 }
 0x116   : > { %1038 = vrcp.f32 %v627_v39  ;;  %v1037_v42 = vpop.eup %1036 }
 0x117   : > { %1040 = vrcp.f32 %v626_v40 }
 0x120   : > { %v1039_v43 = vpop.eup %1038 }
 0x121   : > { %v1041_v44 = vpop.eup %1040  ;;  %v633_v46 = vmul.f32 %v1039_v43, %v1035_v41 }
 0x122   : > { %v632_v47 = vmul.f32 %v1041_v44, %v1037_v42 }
 0x123   : > { %v642_v50 = vmul.f32 %v898_v45, %v633_v46 }
 0x124   : > { %v641_v48 = vmul.f32 %v898_v45, %v632_v47  ;;  %v723_v45 = vld [vmem:[#allocation4] sm:$0x1] }
 0x125   : > { %v647_v51 = vsel %vm643_vm5, %v642_v50, 0.0 }
 0x126   : > { %v644_v49 = vsel %vm643_vm5, %v641_v48, 0.0 }
 0x127   : > { %645 = vadd.xlane.f32.xlu0 %v644_v49 }
 0x12b   : > { %648 = vadd.xlane.f32.xlu0 %v647_v51 }
 0x1b4   : > { %v646_v54 = vpop.xlane.xlu0 %645 }
 0x1b5   : > { %v657_v55 = vadd.f32 %v899_v53, %v646_v54 }
 0x1b7   : > { %v659_v57 = vsel %vm431_vm3, %v657_v55, -1e+30 }
 0x1b8   : > { %v649_v56 = vpop.xlane.xlu0 %648  ;;  %v663_v60 = vsel %vm662_vm6, %v659_v57, -inf }
 0x1b9   : > { %v658_v58 = vadd.f32 %v899_v53, %v649_v56 }
 0x1bb   : > { %v660_v59 = vsel %vm432_vm4, %v658_v58, -1e+30 }
 0x1bc   : > { %v664_v61 = vsel %vm662_vm6, %v660_v59, -inf }
 0x1bd   : > { %v665_v62 = vmax.f32 %v663_v60, %v664_v61 }
 0x1bf   : > { %v666_v63 = vrot.slane %v665_v62, 4 }
 0x1c1   : > { %v667_v0 = vmax.f32 %v665_v62, %v666_v63 }
 0x1c3   : > { %v668_v1 = vrot.slane %v667_v0, 2 }
 0x1c5   : > { %v669_v2 = vmax.f32 %v667_v0, %v668_v1 }
 0x1c7   : > { %v670_v3 = vrot.slane %v669_v2, 1 }
 0x1c9   : > { %v671_v6 = vmax.f32 %v669_v2, %v670_v3 }
 0x1cb   : > { %v672_v7 = vmax.f32 %v661_v4, %v671_v6 }
 0x1cd   : > { %v673_v8 = vsub.f32 %v661_v4, %v672_v7  ;;  %v680_v9 = vrot.slane %v672_v7, %v679_v5  ;;  %737 = vst.msk [vmem:[#allocation2] sm:$0x1] %vm700_vm7, %v672_v7 }
 0x1cf   : > { %v674_v10 = vmul.f32 1.442695, %v673_v8  ;;  %v682_v12 = vsub.f32 %v659_v57, %v680_v9  ;;  %v683_v13 = vsub.f32 %v660_v59, %v680_v9 }
 0x1d1   : > { %1042 = vpow2.f32 %v674_v10  ;;  %v684_v14 = vmul.f32 1.442695, %v682_v12  ;;  %v686_v15 = vmul.f32 1.442695, %v683_v13 }
 0x1d3   : > { %1044 = vpow2.f32 %v684_v14 }
 0x1d4   : > { %1046 = vpow2.f32 %v686_v15 }
 0x1db   : > { %v1043_v16 = vpop.eup %1042 }
 0x1dc   : > { %726 = vperm.xlu0 %1029, %v1043_v16   ;;  %v689_v29 = vmul.f32 %v1043_v16, %v688_v27 }
 0x1dd   : > { %v1045_v17 = vpop.eup %1044 }
 0x1de   : > { %v1047_v18 = vpop.eup %1046  ;;  %v690_v11 = vsel %vm662_vm6, %v1045_v17, 0.0  ;;  %704 = vperm.xlu1 %1028, %v1045_v17  }
 0x1df   : > { %v691_v19 = vsel %vm662_vm6, %v1047_v18, 0.0 }
 0x1e0   : > { %v692_v20 = vadd.f32 %v691_v19, %v690_v11 }
 0x1e2   : > { %v693_v21 = vrot.slane %v692_v20, 4  ;;  %709 = vperm.xlu1 %1028, %v1047_v18  }
 0x1e4   : > { %v694_v22 = vadd.f32 %v693_v21, %v692_v20 }
 0x1e6   : > { %v695_v25 = vrot.slane %v694_v22, 2 }
 0x1e8   : > { %v696_v26 = vadd.f32 %v695_v25, %v694_v22 }
 0x1ea   : > { %v697_v28 = vrot.slane %v696_v26, 1 }
 0x1ec   : > { %v698_v30 = vadd.f32 %v697_v28, %v696_v26 }
 0x1ee   : > { %v699_v31 = vadd.f32 %v698_v30, %v689_v29 }
 0x1f0   : > { %701 = vst.msk [vmem:[#allocation3] sm:$0x1] %vm700_vm7, %v699_v31 }
 0x1f7   : > { %v744_v49 = vld [vmem:[#allocation3] sm:$0x1] (!%p900_p2) }
 0x1f8   : > { %745 = vst.msk [vmem:[%s410_s28] sm:$0x1] (!%p900_p2), %vm700_vm7, %v744_v49 }
 0x25b   : > { %v727_v41 = vpop.permute.xlu0 %726 }
 0x25c   : > { %v732_v43 = vrot.slane %v727_v41, %v679_v5 }
 0x25d   : > { %v705_v32 = vpop.permute.xlu1 %704 }
 0x25e   : > { %v712_v33 = vmul.f32 %v705_v32, %v1335_v23  ;;  %v733_v47 = vmul.f32 %v732_v43, %v723_v45 }
 0x260   : > { %v714_v36 = vsel %vm450_vm2, %v712_v33, 0.0 }
 0x261   : > { %v710_v34 = vpop.permute.xlu1 %709 }
 0x262   : > { %v713_v35 = vmul.f32 %v710_v34, %v1340_v24  ;;  %v742_v24 = vld [vmem:[#allocation2] sm:$0x1] (!%p900_p2) }
 0x263   : > { %743 = vst.msk [vmem:[%s407_s25] sm:$0x1] (!%p900_p2), %vm700_vm7, %v742_v24 }
 0x264   : > { %v715_v37 = vsel %vm450_vm2, %v713_v35, 0.0 }
 0x265   : > { %v716_v38 = vadd.f32 %v715_v37, %v714_v36 }
 0x267   : > { %v717_v39 = vrot.slane %v716_v38, 4 }
 0x269   : > { %v718_v40 = vadd.f32 %v717_v39, %v716_v38 }
 0x26b   : > { %v719_v42 = vrot.slane %v718_v40, 2 }
 0x26d   : > { %v720_v44 = vadd.f32 %v719_v42, %v718_v40 }
 0x26f   : > { %v721_v46 = vrot.slane %v720_v44, 1  ;;  %741 = sbr.rel (%p900_p2) target bundleno = 638 (0x27e), region = 56 }
 0x271   : > { %v722_v48 = vadd.f32 %v721_v46, %v720_v44 }
 0x273   : > { %v734_v23 = vadd.f32 %v733_v47, %v722_v48 }
 0x275   : > { %736 = vst.msk [vmem:[#allocation4] sm:$0x1] %vm735_vm8, %v734_v23 }
 0x27c   : > { %v746_v50 = vld [vmem:[#allocation4] sm:$0x1] }
 0x27d   : > { %747 = vst.msk [vmem:[%s1296_s23] sm:$0x1] %vm735_vm8, %v746_v50 }
 0x27e PF: > { %s901_s14 = sshll.u32 %s1130_s15, 4  ;;  %s773_s30 = sshll.u32 %s1296_s23, 4  ;;  %s774_s30 = int_to_ptr.vmem [resolvable:$true] %s773_s30 }
 0x27f   : > { %s1389_s26 = scalar_lea.hbm %s1448_s9, %s901_s14  ;;  %s1464_s25 = sand.u32 1, %s1118_s12  }
 0x280   : > { %s755_s6 = scalar_lea.sflag [#allocation7], %s1464_s25  ;;  %s1048_s19 = scalar_lea.vmem %s774_s30, 16 }
 0x281   : > { %p1049_p4 = scmp.ne.s32.totalorder %s774_s30, %s1048_s19  ;;  %s1147_s10 = smov [#allocation6]  }
 0x282   : > { %s1052_s28 = sshll.u32 %s1147_s10, 4  ;;  %s1053_s28 = int_to_ptr.vmem [resolvable:$false] %s1052_s28 }
 0x283   : > { %p1050_p5 = pnand %p1049_p4, %p1250_p3  ;;  %s1054_s24 = scalar_lea.vmem %s1053_s28, 32 }
 0x284   : > { %p1055_p7 = scmp.lt.s32.totalorder %s774_s30, %s1053_s28  ;;  %p1056_p8 = scmp.lt.s32.totalorder %s1054_s24, %s1048_s19 }
 0x285   : > { %p1051_p6 = pneg %p1050_p5 }
 0x286   : > { %p1057_p10 = por %p1056_p8, %p1055_p7 }
 0x288   : > { %p1058_p11 = pnand %p1057_p10, %p1051_p6 }
 0x28a   : > { %1061 = shalt.err (!%p1058_p11)
}
 0x28b   : > { %s1062_s15 = scalar_lea.hbm %s1389_s26, 16  ;;  %s1066_s27 = scalar_lea.hbm %s1448_s9, 32 }
 0x28c   : > { %p1063_p12 = scmp.ne.s32.totalorder %s1389_s26, %s1062_s15  ;;  %p1067_p1 = scmp.lt.u32.totalorder %s1389_s26, %s1448_s9 }
 0x28d   : > { %p1068_p2 = scmp.lt.u32.totalorder %s1066_s27, %s1062_s15  ;;  %p1070_p5 = scmp.lt.u32.totalorder %s1062_s15, %s1389_s26 }
 0x28e   : > { %p1064_p13 = pnand %p1063_p12, %p1250_p3 }
 0x28f   : > { %p1069_p4 = por %p1068_p2, %p1067_p1 }
 0x290   : > { %p1065_p0 = pneg %p1064_p13 }
 0x291   : > { %p1071_p6 = por %p1070_p5, %p1069_p4 }
 0x293   : > { %p1072_p7 = pnand %p1071_p6, %p1065_p0 }
 0x295   : > { %1075 = shalt.err (!%p1072_p7)
}
 0x296   : > { %954 = dma.vmem_to_hbm [thread:$0]  (%p1250_p3), %s774_s30, 16, %s1389_s26, %s755_s6  }
 0x297 PF: > { %p960_p8 = scmp.ge.s32.totalorder %s1142_s18, 2  ;;  %s797_s14 = sand.u32 1, %s1114_s11  }
 0x298   : > { %s798_s13 = scalar_lea.sflag [#allocation7], %s797_s14 }
 0x299   : > { %p957_p10 = pnand %p960_p8, %p1260_p9 }
 0x29b   : > { %1109 = dma.done.wait (!%p957_p10), %s798_s13, 16  }
 0x29c   : > { %1111 = vsyncadd (!%p957_p10), %s798_s13, 4294967280  ;;  %s25_s18 = sadd.s32 1, %s1142_s18   ;;  %s1466_s20 = sld [smem:[#allocation9_spill]] }
 0x29d   : > { %p22_p11 = scmp.ge.s32.totalorder %s25_s18, 6   ;;  %s1467_s13 = sld [smem:[#allocation15_spill]] }
 0x29e   : > { %s1468_s14 = sld [smem:[#allocation10_spill]]  ;;  %s1469_s15 = sld [smem:[#allocation11_spill]] }
 0x29f   : > { %s1470_s16 = sld [smem:[#allocation12_spill]]  ;;  %s1471_s17 = sld [smem:[#allocation13_spill]] }
 0x2a0   : > { %s1472_s11 = smov %s1118_s12  ;;  %24 = sbr.rel (!%p22_p11) target bundleno = 8 (0x8), region = 115 }
 0x2a2   : > { %s1473_s12 = smov %s1466_s20 }
 0x2a7   :  { %802 = vsyncpa [#allocation7], 1 }
 0x2a8   :  { %804 = vsyncpa [#allocation7 + $0x1], 1 }

</bundles_post_ra>
